<compile_context>
chip_gen: v5e
topology: v5e:2x2
jax: 0.10.0
libtpu: 0.0.40
codegen_flags: <defaults>
</compile_context>

<pallas_src>
import functools

import jax
import jax.numpy as jnp
from jax.experimental import pallas as pl
from jax.experimental.pallas import tpu as pltpu


def _local_layer_kernel(x_ref, w_ref, b_ref, o_ref, *, nonlinearity: bool):
    x = x_ref[...]                                    # (TB, K)
    if nonlinearity:
        x = jnp.maximum(x, 0)                         # ReLU on the VPU
    # Canonical (M,K)x(K,N) MXU feed; weight was pre-transposed at prep time.
    y = jnp.dot(x, w_ref[...], preferred_element_type=jnp.float32)   # (TB, N)
    o_ref[...] = (y + b_ref[...]).astype(o_ref.dtype)


def _round_up(a: int, m: int) -> int:
    return -(-a // m) * m


def prepare_local_layer_params(weight, bias):
    """One-time parameter prep (NOT per forward call).

    weight: (n_output, n_input) PyTorch layout; bias: (n_output,)
    Returns the weight pre-transposed to (n_input, n_output) and the bias as
    a (1, n_output) row so the kernel body needs no transposes at all.
    """
    w_t = jnp.asarray(weight).T                       # (K, N)
    b_row = jnp.asarray(bias).reshape(1, -1)          # (1, N)
    return w_t, b_row


def local_layer_forward(x, w_t, b_row, *, nonlinearity=False, block_b=2048):
    """x: (B, n_input); w_t: (n_input, n_output); b_row: (1, n_output)."""
    B, n_input = x.shape
    k, n_output = w_t.shape
    assert k == n_input, "weight/input dim mismatch"

    # Sublane-aligned batch tile; large tiles amortize per-step overhead.
    TB = min(block_b, _round_up(B, 8))
    if B >= 16:
        # Guarantee >= 2 grid tiles so both v7x TensorCores get work.
        TB = min(TB, _round_up(-(-B // 2), 8))
    TB = _round_up(TB, 8)
    grid = pl.cdiv(B, TB)   # no x padding: tail block clipped on writeback

    kernel = functools.partial(_local_layer_kernel, nonlinearity=nonlinearity)

    out = pl.pallas_call(
        kernel,
        out_shape=jax.ShapeDtypeStruct((B, n_output), x.dtype),
        grid=(grid,),
        in_specs=[
            pl.BlockSpec((TB, n_input), lambda i: (i, 0)),        # batch tile of x
            pl.BlockSpec((n_input, n_output), lambda i: (0, 0)),  # resident weight (K,N)
            pl.BlockSpec((1, n_output), lambda i: (0, 0)),        # bias row
        ],
        out_specs=pl.BlockSpec((TB, n_output), lambda i: (i, 0)), # unpadded output
        compiler_params=pltpu.CompilerParams(
            dimension_semantics=("parallel",),   # batch tiles are independent
        ),
    )(x, w_t, b_row)
    return out


if __name__ == "__main__":
    # Module defaults: n_input=84, n_output=10. Small batch for the demo.
    B, n_input, n_output = 8, 84, 10
    nonlinearity = True   # exercise the ReLU path of pFedHNPC

    key = jax.random.PRNGKey(0)
    kx, kw, kb = jax.random.split(key, 3)

    # Deterministic init mimicking nn.Linear's uniform(-1/sqrt(fan_in), +).
    bound = 1.0 / (n_input ** 0.5)
    weight = jax.random.uniform(kw, (n_output, n_input), jnp.float32, -bound, bound)
    bias = jax.random.uniform(kb, (n_output,), jnp.float32, -bound, bound)
    x = jax.random.normal(kx, (B, n_input), jnp.float32)

    # One-time parameter prep (pre-transpose); reused across calls.
    w_t, b_row = prepare_local_layer_params(weight, bias)

    out = local_layer_forward(x, w_t, b_row, nonlinearity=nonlinearity)
    out = jax.block_until_ready(out)

    # Reference check in plain JAX (same semantics as the PyTorch module).
    ref = jnp.maximum(x, 0.0) if nonlinearity else x
    ref = ref @ weight.T + bias
    assert out.shape == (B, n_output)
    assert jnp.allclose(out, ref, atol=1e-5, rtol=1e-5)

    # Multi-tile path with a batch that is NOT a multiple of the tile
    # (exercises the no-pad / clipped-tail-block writeback).
    B2 = 21
    x2 = jax.random.normal(jax.random.PRNGKey(1), (B2, n_input), jnp.float32)
    out2 = local_layer_forward(x2, w_t, b_row, nonlinearity=nonlinearity, block_b=8)
    out2 = jax.block_until_ready(out2)
    ref2 = (jnp.maximum(x2, 0.0) if nonlinearity else x2) @ weight.T + bias
    assert out2.shape == (B2, n_output)
    assert jnp.allclose(out2, ref2, atol=1e-5, rtol=1e-5)

    # Also check the linear-only (no ReLU) variant.
    out3 = local_layer_forward(x2, w_t, b_row, nonlinearity=False, block_b=8)
    out3 = jax.block_until_ready(out3)
    ref3 = x2 @ weight.T + bias
    assert jnp.allclose(out3, ref3, atol=1e-5, rtol=1e-5)

    print("KERNEL_OK")
</pallas_src>

<mosaic_0001>
module attributes {stable_mosaic.version = 11 : i64} {
  func.func @_local_layer_kernel(%arg0: i32, %arg1: memref<8x84xf32, #tpu.memory_space<vmem>>, %arg2: memref<84x10xf32, #tpu.memory_space<vmem>>, %arg3: memref<1x10xf32, #tpu.memory_space<vmem>>, %arg4: memref<8x10xf32, #tpu.memory_space<vmem>>) attributes {dimension_semantics = [#tpu.dimension_semantics<parallel>], iteration_bounds = array<i64: 1>, scalar_prefetch = 0 : i64, scratch_operands = 0 : i64, tpu.core_type = #tpu.core_type<tc>, window_params = [{transform_indices = @transform_0, window_bounds = array<i64: 8, 84>}, {pipeline_mode = #tpu.pipeline_mode<synchronous>, transform_indices = @transform_1, window_bounds = array<i64: 84, 10>}, {pipeline_mode = #tpu.pipeline_mode<synchronous>, transform_indices = @transform_2, window_bounds = array<i64: 1, 10>}, {transform_indices = @transform_3, window_bounds = array<i64: 8, 10>}]} {
    %c0 = arith.constant 0 : index
    %c0_0 = arith.constant 0 : index
    %0 = vector.load %arg1[%c0, %c0_0] : memref<8x84xf32, #tpu.memory_space<vmem>>, vector<8x84xf32>
    %cst = arith.constant 0.000000e+00 : f32
    %1 = vector.broadcast %cst : f32 to vector<8x84xf32>
    %2 = arith.maximumf %0, %1 : vector<8x84xf32>
    %c0_1 = arith.constant 0 : index
    %c0_2 = arith.constant 0 : index
    %3 = vector.load %arg2[%c0_1, %c0_2] : memref<84x10xf32, #tpu.memory_space<vmem>>, vector<84x10xf32>
    %cst_3 = arith.constant dense<0.000000e+00> : vector<8x10xf32>
    %4 = tpu.matmul %2, %3, %cst_3 {dimension_numbers = #tpu.dot_dimension_numbers<[1], [0], [0], [1], [0, 0, 1, 1], [], []>} : vector<8x84xf32>, vector<84x10xf32>, vector<8x10xf32> -> vector<8x10xf32>
    %c0_4 = arith.constant 0 : index
    %c0_5 = arith.constant 0 : index
    %5 = vector.load %arg3[%c0_4, %c0_5] : memref<1x10xf32, #tpu.memory_space<vmem>>, vector<1x10xf32>
    %6 = vector.broadcast %5 : vector<1x10xf32> to vector<8x10xf32>
    %7 = arith.addf %4, %6 : vector<8x10xf32>
    %c0_6 = arith.constant 0 : index
    %c0_7 = arith.constant 0 : index
    %8 = vector.load %arg4[%c0_6, %c0_7] : memref<8x10xf32, #tpu.memory_space<vmem>>, vector<8x10xf32>
    tpu.vector_store %arg4[%c0_6, %c0_7], %7 {strides = array<i32>} : memref<8x10xf32, #tpu.memory_space<vmem>>, vector<8x10xf32>,
    return
  }
  func.func @transform_0(%arg0: i32) -> (i32, i32) {
    %c0_i32 = arith.constant 0 : i32
    %c0_i32_0 = arith.constant 0 : i32
    return %arg0, %c0_i32 : i32, i32
  }
  func.func @transform_1(%arg0: i32) -> (i32, i32) {
    %c0_i32 = arith.constant 0 : i32
    %c0_i32_0 = arith.constant 0 : i32
    %c0_i32_1 = arith.constant 0 : i32
    return %c0_i32, %c0_i32_0 : i32, i32
  }
  func.func @transform_2(%arg0: i32) -> (i32, i32) {
    %c0_i32 = arith.constant 0 : i32
    %c0_i32_0 = arith.constant 0 : i32
    %c0_i32_1 = arith.constant 0 : i32
    return %c0_i32, %c0_i32_0 : i32, i32
  }
  func.func @transform_3(%arg0: i32) -> (i32, i32) {
    %c0_i32 = arith.constant 0 : i32
    %c0_i32_0 = arith.constant 0 : i32
    return %arg0, %c0_i32 : i32, i32
  }
}

</mosaic_0001>

<bundles_post_ra>
// kernel: tpu_custom_call.1
= control target key start
LH: loop header
LB: loop body
LE: loop exit
PB: predicated region body
PF: predicated region fallthrough
CT: control target
= control target key end

     0   :  { %vm36_vm0 = vcmask 1043456   ;;  %s171_s0 = inlined_call_operand.vmem [shape: f32[8,84], index: 0, kind: input, shape index: {}]   ;;  %s172_s1 = inlined_call_operand.vmem [shape: f32[84,10], index: 1, kind: input, shape index: {}]   ;;  %s173_s2 = inlined_call_operand.vmem [shape: f32[1,10], index: 2, kind: input, shape index: {}]   ;;  %s174_s3 = inlined_call_operand.hbm [shape: f32[8,10], index: 3, kind: output, shape index: {}]  }
   0x1   :  { %v27_v0 = vld [vmem:[%s172_s1 + $0x50] sm:$0xf]  ;;  %v26_v1 = vld [vmem:[%s172_s1 + $0x48] sm:$0xff]  ;;  %v25_v2 = vld [vmem:[%s172_s1 + $0x40] sm:$0xff] }
   0x2   :  { %78 = vmatpush.msk.msra.mxu0 %vm36_vm0, %v27_v0  ;;  %v24_v3 = vld [vmem:[%s172_s1 + $0x38] sm:$0xff] }
   0x4   :  { %46 = vmatpush.msra.mxu0 %v26_v1 }
   0x6   :  { %47 = vmatpush.msra.mxu0 %v25_v2 }
   0x7   :  { %8 = vsyncpa [#allocation3], 0  ;;  %v23_v4 = vld [vmem:[%s172_s1 + $0x30] sm:$0xff]  ;;  %v22_v5 = vld [vmem:[%s172_s1 + $0x28] sm:$0xff]  ;;  %vm32_vm1 = vcmask 687104   ;;  %s108_s11 = smov [#allocation2]  }
   0x8   :  { %48 = vmatpush.msra.mxu0 %v24_v3  ;;  %v21_v6 = vld [vmem:[%s172_s1 + $0x20] sm:$0xff]  ;;  %v20_v7 = vld [vmem:[%s172_s1 + $0x18] sm:$0xff]  ;;  %v19_v8 = vld [vmem:[%s172_s1 + $0x10] sm:$0xff]  ;;  %s69_s14 = sshll.u32 %s174_s3, 4  ;;  %vm60_vm2 = vcmask 80896   ;;  %s70_s14 = int_to_ptr.hbm [resolvable:$true] %s69_s14 }
   0x9   :  { %v15_v9 = vld [vmem:[%s171_s0] sm:$0xff]  ;;  %v18_v10 = vld [vmem:[%s172_s1 + $0x8] sm:$0xff]  ;;  %s67_s0 = sshll.u32 %s108_s11, 4  ;;  %s68_s0 = int_to_ptr.vmem [resolvable:$true] %s67_s0 }
   0xa   :  { %49 = vmatpush.msra.mxu0 %v23_v4  ;;  %v17_v11 = vld [vmem:[%s172_s1] sm:$0xff]  ;;  %v16_v12 = vmax.f32 %v15_v9, 0.0 }
   0xb   :  { %v81_v13 = vld [vmem:[%s173_s2] ss:$0 sm:$0xff] }
   0xc   :  { %50 = vmatpush.msra.mxu0 %v22_v5 }
   0xe   :  { %51 = vmatpush.msra.mxu0 %v21_v6 }
  0x10   :  { %52 = vmatpush.msra.mxu0 %v20_v7 }
  0x12   :  { %53 = vmatpush.msra.mxu0 %v19_v8 }
  0x14   :  { %54 = vmatpush.msra.mxu0 %v18_v10 }
  0x16   :  { %55 = vmatpush.msra.mxu0 %v17_v11 }
  0x17   :  { %79 = vmatmul.msk.f32.vlgmr.msra.gmra.mxu0 %vm32_vm1, %v16_v12 }
  0x94   :  { %v57_v14 = vpop.f32.mrf.mxu0 }
  0x95   :  { %v58_v15 = vadd.f32 %v81_v13, %v57_v14 }
  0x97   :  { %61 = vst.msk [vmem:[#allocation2] sm:$0xff] %vm60_vm2, %v58_v15 }
  0x98   :  { %72 = dma.vmem_to_hbm [thread:$0]  %s68_s0, 128, %s70_s14, [#allocation3]  }
  0x99   :  { %106 = dma.done.wait [#allocation3], 128  }
  0x9a   :  { %107 = vsyncadd [#allocation3], 4294967168 }
  0x9b   :  { %77 = vsyncpa [#allocation3], 1 }

</bundles_post_ra>
